<compile_context>
chip_gen: v5e
topology: v5e:2x2
jax: 0.10.0
libtpu: 0.0.40
codegen_flags: <defaults>
</compile_context>

<pallas_src>
import functools

import numpy as np
import jax
import jax.numpy as jnp
from jax.experimental import pallas as pl
from jax.experimental.pallas import tpu as pltpu

TRAIN_SIZE = (1, 3, 256, 256)  # matches `train_size` in the PyTorch file

_LOOP_MAX = 8  # max per-channel Hp matmuls before switching to the fused path


def _avgpool_kernel(hp_ref, wp_ref, x_ref, o_ref, *, c_blk, h_pad, out_h,
                    fuse_lhs, cdt):
    f32 = jnp.float32
    wp = wp_ref[...]                                   # (w, out_w), compute dtype
    w = wp.shape[0]
    # Fused RHS matmul over the whole channel block (layout-free reshape since
    # h_pad is a multiple of the sublane packing for `cdt`).
    x2d = x_ref[...].reshape(c_blk * h_pad, w).astype(cdt)
    t_all = jnp.dot(x2d, wp, preferred_element_type=f32)   # (c_blk*h_pad, out_w) f32
    t_all = t_all.astype(cdt)   # bf16 path: keep MXU operands narrow; f32: no-op

    if fuse_lhs:
        # Single MXU call with a block-diagonal Hp (inv_area already folded in).
        out_all = jnp.dot(hp_ref[...], t_all,
                          preferred_element_type=f32)       # (c_blk*out_h, out_w)
        o_ref[...] = out_all.reshape(c_blk, out_h,
                                     out_all.shape[-1]).astype(o_ref.dtype)
    else:
        hp = hp_ref[...]                                    # (out_h, h_pad)
        for ci in range(c_blk):
            t_c = t_all[ci * h_pad:(ci + 1) * h_pad, :]     # aligned static slice
            o_ref[ci] = jnp.dot(hp, t_c,
                                preferred_element_type=f32).astype(o_ref.dtype)


def _choose_c_blk(total, h_pad, w, out_h, out_w, x_bytes, cdt_bytes, vmem_budget):
    """VMEM-budget-driven channel-block size + LHS fusion mode."""
    per_chan = (2 * h_pad * w * x_bytes          # x block (double-buffered)
                + 2 * out_h * out_w * x_bytes    # out block (double-buffered)
                + h_pad * out_w * 4              # t_all (f32)
                + h_pad * out_w * cdt_bytes      # t_all cast to compute dtype
                + out_h * out_w * 4)             # f32 result before cast
    const = 2 * (out_h * h_pad + w * out_w) * cdt_bytes     # Hp, Wp (double-buffered)
    c_mem = max(1, int((vmem_budget - const) // per_chan))
    c_blk = min(c_mem, total, 256)
    if total >= 2:
        # keep >= 2 grid steps so both v7x TensorCores get work
        c_blk = min(c_blk, max(1, (total + 1) // 2))

    fuse_lhs = False
    if c_blk > _LOOP_MAX:
        # Fused block-diagonal Hp: bound the fused dim (FLOP overcount ~ c_blk,
        # Hp_bd VMEM ~ c_blk^2) and require a layout-free output reshape.
        bd_cap = max(_LOOP_MAX, 1024 // max(out_h, h_pad))
        if out_h % 8 == 0 and bd_cap > _LOOP_MAX:
            c_blk = min(c_blk, bd_cap)
            fuse_lhs = True
        else:
            c_blk = _LOOP_MAX
    return max(1, c_blk), fuse_lhs


def avg_pool2d(x, kernel_size=None, base_size=None, auto_pad=True, fast_imp=False,
               compute_dtype=None):
    """Forward pass of FS_Net.AvgPool2d (fast_imp=False path), NCHW layout."""
    n, c, h, w = x.shape
    if kernel_size is None and base_size is not None:
        if isinstance(base_size, int):
            base_size = (base_size, base_size)
        kernel_size = [h * base_size[0] // TRAIN_SIZE[-2],
                       w * base_size[1] // TRAIN_SIZE[-1]]
    # TODO(synk): fast_imp strided-cumsum + F.interpolate path not implemented.
    assert not fast_imp, "fast_imp path not implemented"
    assert kernel_size is not None and kernel_size[0] >= 1 and kernel_size[1] >= 1

    k1 = min(h, int(kernel_size[0]))
    k2 = min(w, int(kernel_size[1]))
    _h, _w = h - k1 + 1, w - k2 + 1
    pad_top = (h - _h) // 2
    pad_left = (w - _w) // 2
    out_h, out_w = (h, w) if auto_pad else (_h, _w)

    # ---- compute dtype (bf16 MXU path for bf16 inputs or explicit opt-in).
    if compute_dtype is None:
        use_bf16 = (x.dtype == jnp.dtype(jnp.bfloat16))
    else:
        use_bf16 = (jnp.dtype(compute_dtype) == jnp.dtype(jnp.bfloat16))
    cdt = jnp.bfloat16 if use_bf16 else jnp.float32
    sub = 16 if use_bf16 else 8          # sublane packing for layout-free reshape
    h_pad = ((h + sub - 1) // sub) * sub

    # ---- constant selector matrices (box-sum + replicate-pad + 1/area folded).
    if auto_pad:
        starts_h = np.clip(np.arange(out_h) - pad_top, 0, _h - 1)
        starts_w = np.clip(np.arange(out_w) - pad_left, 0, _w - 1)
    else:
        starts_h = np.arange(_h)
        starts_w = np.arange(_w)
    rr = np.arange(h_pad)
    cc = np.arange(w)
    inv_area = 1.0 / float(k1 * k2)
    Hp = (((rr[None, :] >= starts_h[:, None])
           & (rr[None, :] < starts_h[:, None] + k1)).astype(np.float32)
          * inv_area)                                                    # (out_h, h_pad)
    Wp = ((cc[:, None] >= starts_w[None, :])
          & (cc[:, None] < starts_w[None, :] + k2)).astype(np.float32)  # (w, out_w)

    # ---- generation-aware VMEM budget / limit.
    try:
        vmem_phys = int(pltpu.get_tpu_info().vmem_capacity_bytes)
    except Exception:
        vmem_phys = 64 * 1024 * 1024   # conservative (v7x per-TC VMEM)
    vmem_budget = min(vmem_phys * 2 // 5, 36 * 1024 * 1024)
    vmem_limit = int(max(32 * 1024 * 1024,
                         min(vmem_phys * 3 // 4, 100 * 1024 * 1024)))

    total = n * c
    x_bytes = jnp.dtype(x.dtype).itemsize
    cdt_bytes = jnp.dtype(cdt).itemsize
    c_blk, fuse_lhs = _choose_c_blk(total, h_pad, w, out_h, out_w,
                                    x_bytes, cdt_bytes, vmem_budget)
    num_groups = -(-total // c_blk)
    total_pad = num_groups * c_blk

    # ---- pad the flattened channel axis and h (zero rows never selected by Hp).
    x_flat = x.reshape(total, h, w)
    if total_pad != total or h_pad != h:
        x_flat = jnp.pad(x_flat, ((0, total_pad - total), (0, h_pad - h), (0, 0)))

    if fuse_lhs:
        hp_mat = np.kron(np.eye(c_blk, dtype=np.float32), Hp)   # block-diagonal
    else:
        hp_mat = Hp
    hp_mat = jnp.asarray(hp_mat, dtype=cdt)
    wp_mat = jnp.asarray(Wp, dtype=cdt)

    kern = functools.partial(_avgpool_kernel, c_blk=c_blk, h_pad=h_pad,
                             out_h=out_h, fuse_lhs=fuse_lhs, cdt=cdt)

    out_flat = pl.pallas_call(
        kern,
        out_shape=jax.ShapeDtypeStruct((total_pad, out_h, out_w), x.dtype),
        grid=(num_groups,),
        in_specs=[
            pl.BlockSpec(hp_mat.shape, lambda g: (0, 0)),        # Hp: resident
            pl.BlockSpec(wp_mat.shape, lambda g: (0, 0)),        # Wp: resident
            pl.BlockSpec((c_blk, h_pad, w), lambda g: (g, 0, 0)),
        ],
        out_specs=pl.BlockSpec((c_blk, out_h, out_w), lambda g: (g, 0, 0)),
        compiler_params=pltpu.CompilerParams(
            dimension_semantics=("parallel",),
            vmem_limit_bytes=vmem_limit),
    )(hp_mat, wp_mat, x_flat)

    return out_flat[:total].reshape(n, c, out_h, out_w)


def _ref_avg_pool2d(x, k1, k2, auto_pad=True):
    """Pure-JAX reference mirroring the PyTorch code (fast_imp=False)."""
    n, c, h, w = x.shape
    x = x.astype(jnp.float32)
    s = jnp.cumsum(jnp.cumsum(x, axis=-1), axis=-2)
    s = jnp.pad(s, ((0, 0), (0, 0), (1, 0), (1, 0)))
    s1 = s[:, :, :-k1, :-k2]
    s2 = s[:, :, :-k1, k2:]
    s3 = s[:, :, k1:, :-k2]
    s4 = s[:, :, k1:, k2:]
    out = (s4 + s1 - s2 - s3) / (k1 * k2)
    if auto_pad:
        _h, _w = out.shape[2:]
        out = jnp.pad(out, ((0, 0), (0, 0),
                            ((h - _h) // 2, (h - _h + 1) // 2),
                            ((w - _w) // 2, (w - _w + 1) // 2)), mode="edge")
    return out


if __name__ == "__main__":
    key = jax.random.PRNGKey(0)
    k0, k1_, k2_ = jax.random.split(key, 3)

    # A) base_size path (16*112//256 = 7), auto_pad, f32, loop LHS path.
    x = jax.random.normal(k0, (2, 4, 16, 16), dtype=jnp.float32)
    out = jax.block_until_ready(avg_pool2d(x, base_size=112, auto_pad=True))
    ref = _ref_avg_pool2d(x, 7, 7, auto_pad=True)
    assert out.shape == (2, 4, 16, 16), out.shape
    assert float(jnp.max(jnp.abs(out - ref))) < 1e-3

    # B) auto_pad=False (valid-window output).
    out2 = jax.block_until_ready(avg_pool2d(x, kernel_size=(7, 7), auto_pad=False))
    ref2 = _ref_avg_pool2d(x, 7, 7, auto_pad=False)
    assert out2.shape == ref2.shape, (out2.shape, ref2.shape)
    assert float(jnp.max(jnp.abs(out2 - ref2))) < 1e-3

    # C) many channels -> fused block-diagonal Hp path, f32.
    xc = jax.random.normal(k1_, (1, 24, 16, 16), dtype=jnp.float32)
    out3 = jax.block_until_ready(avg_pool2d(xc, kernel_size=(7, 7), auto_pad=True))
    ref3 = _ref_avg_pool2d(xc, 7, 7, auto_pad=True)
    assert float(jnp.max(jnp.abs(out3 - ref3))) < 1e-3

    # D) bf16 input -> bf16 MXU operand path (fused LHS).
    xb = xc.astype(jnp.bfloat16)
    out4 = jax.block_until_ready(avg_pool2d(xb, kernel_size=(7, 7), auto_pad=True))
    ref4 = _ref_avg_pool2d(xb, 7, 7, auto_pad=True)
    assert out4.dtype == jnp.bfloat16
    assert float(jnp.max(jnp.abs(out4.astype(jnp.float32) - ref4))) < 5e-2

    # E) odd h (h % 8 != 0) and non-divisible N*C -> exercises h / channel padding.
    xo = jax.random.normal(k2_, (1, 3, 13, 20), dtype=jnp.float32)
    out5 = jax.block_until_ready(avg_pool2d(xo, kernel_size=(5, 5), auto_pad=True))
    ref5 = _ref_avg_pool2d(xo, 5, 5, auto_pad=True)
    assert out5.shape == (1, 3, 13, 20), out5.shape
    assert float(jnp.max(jnp.abs(out5 - ref5))) < 1e-3

    print("KERNEL_OK")
</pallas_src>

<mosaic_0001>
module attributes {stable_mosaic.version = 11 : i64} {
  func.func @_avgpool_kernel(%arg0: i32, %arg1: memref<16x16xf32, #tpu.memory_space<vmem>>, %arg2: memref<16x16xf32, #tpu.memory_space<vmem>>, %arg3: memref<4x16x16xf32, #tpu.memory_space<vmem>>, %arg4: memref<4x16x16xf32, #tpu.memory_space<vmem>>) attributes {dimension_semantics = [#tpu.dimension_semantics<parallel>], iteration_bounds = array<i64: 2>, scalar_prefetch = 0 : i64, scratch_operands = 0 : i64, tpu.core_type = #tpu.core_type<tc>, window_params = [{pipeline_mode = #tpu.pipeline_mode<synchronous>, transform_indices = @transform_0, window_bounds = array<i64: 16, 16>}, {pipeline_mode = #tpu.pipeline_mode<synchronous>, transform_indices = @transform_1, window_bounds = array<i64: 16, 16>}, {transform_indices = @transform_2, window_bounds = array<i64: 4, 16, 16>}, {transform_indices = @transform_3, window_bounds = array<i64: 4, 16, 16>}]} {
    %c0 = arith.constant 0 : index
    %c0_0 = arith.constant 0 : index
    %0 = vector.load %arg2[%c0, %c0_0] : memref<16x16xf32, #tpu.memory_space<vmem>>, vector<16x16xf32>
    %c0_1 = arith.constant 0 : index
    %c0_2 = arith.constant 0 : index
    %c0_3 = arith.constant 0 : index
    %1 = vector.load %arg3[%c0_1, %c0_2, %c0_3] : memref<4x16x16xf32, #tpu.memory_space<vmem>>, vector<4x16x16xf32>
    %2 = vector.shape_cast %1 : vector<4x16x16xf32> to vector<64x16xf32>
    %cst = arith.constant dense<0.000000e+00> : vector<64x16xf32>
    %3 = tpu.matmul %2, %0, %cst {dimension_numbers = #tpu.dot_dimension_numbers<[1], [0], [0], [1], [0, 0, 1, 1], [], []>} : vector<64x16xf32>, vector<16x16xf32>, vector<64x16xf32> -> vector<64x16xf32>
    %c0_4 = arith.constant 0 : index
    %c0_5 = arith.constant 0 : index
    %4 = vector.load %arg1[%c0_4, %c0_5] : memref<16x16xf32, #tpu.memory_space<vmem>>, vector<16x16xf32>
    %5 = vector.extract_strided_slice %3 {offsets = [0, 0], sizes = [16, 16], strides = [1, 1]} : vector<64x16xf32> to vector<16x16xf32>
    %cst_6 = arith.constant dense<0.000000e+00> : vector<16x16xf32>
    %6 = tpu.matmul %4, %5, %cst_6 {dimension_numbers = #tpu.dot_dimension_numbers<[1], [0], [0], [1], [0, 0, 1, 1], [], []>} : vector<16x16xf32>, vector<16x16xf32>, vector<16x16xf32> -> vector<16x16xf32>
    %c0_7 = arith.constant 0 : index
    %c0_8 = arith.constant 0 : index
    %c0_9 = arith.constant 0 : index
    %7 = vector.load %arg4[%c0_7, %c0_8, %c0_9] : memref<4x16x16xf32, #tpu.memory_space<vmem>>, vector<1x16x16xf32>
    %8 = vector.shape_cast %7 : vector<1x16x16xf32> to vector<16x16xf32>
    %9 = vector.shape_cast %6 : vector<16x16xf32> to vector<1x16x16xf32>
    tpu.vector_store %arg4[%c0_7, %c0_8, %c0_9], %9 {strides = array<i32>} : memref<4x16x16xf32, #tpu.memory_space<vmem>>, vector<1x16x16xf32>,
    %10 = vector.extract_strided_slice %3 {offsets = [16, 0], sizes = [16, 16], strides = [1, 1]} : vector<64x16xf32> to vector<16x16xf32>
    %cst_10 = arith.constant dense<0.000000e+00> : vector<16x16xf32>
    %11 = tpu.matmul %4, %10, %cst_10 {dimension_numbers = #tpu.dot_dimension_numbers<[1], [0], [0], [1], [0, 0, 1, 1], [], []>} : vector<16x16xf32>, vector<16x16xf32>, vector<16x16xf32> -> vector<16x16xf32>
    %c1 = arith.constant 1 : index
    %c0_11 = arith.constant 0 : index
    %c0_12 = arith.constant 0 : index
    %12 = vector.load %arg4[%c1, %c0_11, %c0_12] : memref<4x16x16xf32, #tpu.memory_space<vmem>>, vector<1x16x16xf32>
    %13 = vector.shape_cast %12 : vector<1x16x16xf32> to vector<16x16xf32>
    %14 = vector.shape_cast %11 : vector<16x16xf32> to vector<1x16x16xf32>
    tpu.vector_store %arg4[%c1, %c0_11, %c0_12], %14 {strides = array<i32>} : memref<4x16x16xf32, #tpu.memory_space<vmem>>, vector<1x16x16xf32>,
    %15 = vector.extract_strided_slice %3 {offsets = [32, 0], sizes = [16, 16], strides = [1, 1]} : vector<64x16xf32> to vector<16x16xf32>
    %cst_13 = arith.constant dense<0.000000e+00> : vector<16x16xf32>
    %16 = tpu.matmul %4, %15, %cst_13 {dimension_numbers = #tpu.dot_dimension_numbers<[1], [0], [0], [1], [0, 0, 1, 1], [], []>} : vector<16x16xf32>, vector<16x16xf32>, vector<16x16xf32> -> vector<16x16xf32>
    %c2 = arith.constant 2 : index
    %c0_14 = arith.constant 0 : index
    %c0_15 = arith.constant 0 : index
    %17 = vector.load %arg4[%c2, %c0_14, %c0_15] : memref<4x16x16xf32, #tpu.memory_space<vmem>>, vector<1x16x16xf32>
    %18 = vector.shape_cast %17 : vector<1x16x16xf32> to vector<16x16xf32>
    %19 = vector.shape_cast %16 : vector<16x16xf32> to vector<1x16x16xf32>
    tpu.vector_store %arg4[%c2, %c0_14, %c0_15], %19 {strides = array<i32>} : memref<4x16x16xf32, #tpu.memory_space<vmem>>, vector<1x16x16xf32>,
    %20 = vector.extract_strided_slice %3 {offsets = [48, 0], sizes = [16, 16], strides = [1, 1]} : vector<64x16xf32> to vector<16x16xf32>
    %cst_16 = arith.constant dense<0.000000e+00> : vector<16x16xf32>
    %21 = tpu.matmul %4, %20, %cst_16 {dimension_numbers = #tpu.dot_dimension_numbers<[1], [0], [0], [1], [0, 0, 1, 1], [], []>} : vector<16x16xf32>, vector<16x16xf32>, vector<16x16xf32> -> vector<16x16xf32>
    %c3 = arith.constant 3 : index
    %c0_17 = arith.constant 0 : index
    %c0_18 = arith.constant 0 : index
    %22 = vector.load %arg4[%c3, %c0_17, %c0_18] : memref<4x16x16xf32, #tpu.memory_space<vmem>>, vector<1x16x16xf32>
    %23 = vector.shape_cast %22 : vector<1x16x16xf32> to vector<16x16xf32>
    %24 = vector.shape_cast %21 : vector<16x16xf32> to vector<1x16x16xf32>
    tpu.vector_store %arg4[%c3, %c0_17, %c0_18], %24 {strides = array<i32>} : memref<4x16x16xf32, #tpu.memory_space<vmem>>, vector<1x16x16xf32>,
    return
  }
  func.func @transform_0(%arg0: i32) -> (i32, i32) {
    %c0_i32 = arith.constant 0 : i32
    %c0_i32_0 = arith.constant 0 : i32
    %c0_i32_1 = arith.constant 0 : i32
    return %c0_i32, %c0_i32_0 : i32, i32
  }
  func.func @transform_1(%arg0: i32) -> (i32, i32) {
    %c0_i32 = arith.constant 0 : i32
    %c0_i32_0 = arith.constant 0 : i32
    %c0_i32_1 = arith.constant 0 : i32
    return %c0_i32, %c0_i32_0 : i32, i32
  }
  func.func @transform_2(%arg0: i32) -> (i32, i32, i32) {
    %c0_i32 = arith.constant 0 : i32
    %c0_i32_0 = arith.constant 0 : i32
    %c0_i32_1 = arith.constant 0 : i32
    return %arg0, %c0_i32, %c0_i32_0 : i32, i32, i32
  }
  func.func @transform_3(%arg0: i32) -> (i32, i32, i32) {
    %c0_i32 = arith.constant 0 : i32
    %c0_i32_0 = arith.constant 0 : i32
    %c0_i32_1 = arith.constant 0 : i32
    return %arg0, %c0_i32, %c0_i32_0 : i32, i32, i32
  }
}

</mosaic_0001>

<bundles_post_ra>
// kernel: tpu_custom_call.1
= control target key start
LH: loop header
LB: loop body
LE: loop exit
PB: predicated region body
PF: predicated region fallthrough
CT: control target
= control target key end

     0   :  { %8 = vsyncpa [#allocation3], 0  ;;  %s1017_s0 = inlined_call_operand.hbm [shape: f32[16,16], index: 0, kind: input, shape index: {}]   ;;  %s1018_s1 = inlined_call_operand.hbm [shape: f32[16,16], index: 1, kind: input, shape index: {}]   ;;  %s1019_s2 = inlined_call_operand.hbm [shape: f32[8,16,16], index: 2, kind: input, shape index: {}]   ;;  %s1020_s3 = inlined_call_operand.hbm [shape: f32[8,16,16], index: 3, kind: output, shape index: {}]  }
   0x1   :  { %9 = vsyncpa [#allocation6], 0 }
   0x2   :  { %10 = vsyncpa [#allocation4], 0 }
   0x3   :  { %12 = vsyncpa [#allocation4 + $0x1], 0  ;;  %s834_s12 = smov 0   ;;  %s836_s13 = smov 0  }
   0x4   :  { %s838_s14 = smov 0   ;;  %s840_s15 = smov 0  }
   0x5 LB: > { %s855_s16 = sadd.s32 4294967295, %s806_s15   ;;  %s521_s17 = sadd.s32 4294967294, %s806_s15   ;;  %s806_s15 = sphi %s840_s15, %s1030_s15   ;;  %s802_s14 = sphi %s838_s14, %s1029_s14   ;;  %s798_s13 = sphi %s836_s13, %s1028_s13   ;;  %s794_s12 = sphi %s834_s12, %s1027_s12  }
   0x6   : > { %p80_p0 = scmp.ne.s32.totalorder %s798_s13, %s794_s12  ;;  %p81_p1 = scmp.eq.s32.totalorder %s855_s16, 0 }
   0x7   : > { %p104_p2 = scmp.eq.s32.totalorder %s855_s16, 1  ;;  %p110_p3 = scmp.eq.s32.totalorder %s521_s17, 1 }
   0x8   : > { %p864_p4 = por %p81_p1, %p80_p0  ;;  %p522_p5 = scmp.ge.s32.totalorder %s806_s15, 1 }
   0x9   : > { %p869_p6 = por %p110_p3, %p80_p0  ;;  %p117_p7 = scmp.lt.s32.totalorder %s806_s15, 3 }
   0xa   : > { %s128_s22 = sshll.u32 %s1017_s0, 4  ;;  %s808_s24 = smov [#allocation2]   ;;  %s129_s22 = int_to_ptr.hbm [resolvable:$true] %s128_s22 }
   0xb   : > { %p877_p8 = pnand %p522_p5, %p117_p7  ;;  %s130_s25 = sshll.u32 %s808_s24, 4  ;;  %s131_s25 = int_to_ptr.vmem [resolvable:$true] %s130_s25 }
   0xc   : > { %s142_s28 = sshll.u32 %s1018_s1, 4  ;;  %s809_s29 = smov 128   ;;  %s143_s28 = int_to_ptr.hbm [resolvable:$true] %s142_s28 }
   0xd   : > { %p583_p9 = pneg %p877_p8  ;;  %s810_s30 = smov 8  }
   0xe   : > { %s811_s4 = smov [#allocation5]   ;;  %s896_s6 = sadd.s32 1, %s806_s15  }
   0xf   : > { %p584_p10 = pnand %p583_p9, %p81_p1  ;;  %s144_s5 = sshll.u32 %s811_s4, 4  ;;  %s145_s5 = int_to_ptr.vmem [resolvable:$true] %s144_s5 }
  0x10   : > { %s67_s7 = sadd.s32 1, %s802_s14  ;;  %s64_s8 = ssub.s32 %s806_s15, %s896_s6 }
  0x11   : > { %586 = dma.hbm_to_vmem [thread:$0]  (!%p584_p10), %s129_s22, 256, %s131_s25, [#allocation3], %s809_s29, %s809_s29, %s810_s30  }
  0x12   : > { %589 = dma.hbm_to_vmem [thread:$0]  (!%p584_p10), %s143_s28, 256, %s145_s5, [#allocation6], %s809_s29, %s809_s29, %s810_s30  }
  0x13   : > { %p74_p12 = scmp.ne.s32.totalorder %s802_s14, %s798_s13  ;;  %p65_p13 = scmp.eq.s32.totalorder %s64_s8, 0 }
  0x14   : > { %p75_p0 = scmp.eq.s32.totalorder %s806_s15, 0  ;;  %p600_p7 = scmp.lt.s32.totalorder %s806_s15, 2 }
  0x15   : > { %p906_p3 = por %p104_p2, %p74_p12  ;;  %s158_s11 = sand.u32 1, %s806_s15  }
  0x16   : > { %s911_s10 = scalar_select %p65_p13, %s802_s14, %s67_s7  }
  0x17   : > { %p76_p5 = por %p75_p0, %p74_p12  ;;  %s160_s17 = sand.u32 1, %s802_s14  }
  0x18   : > { %s526_s20 = sshll.u32 %s160_s17, 6  ;;  %s564_s21 = sshll.u32 %s806_s15, 6 }
  0x19   : > { %s168_s25 = scalar_lea.hbm %s1019_s2, %s564_s21  ;;  %s162_s27 = scalar_lea.vmem [#allocation7], %s526_s20 }
  0x1a   : > { %s169_s26 = sshll.u32 %s168_s25, 4  ;;  %s171_s28 = sshll.u32 %s162_s27, 4  ;;  %s170_s26 = int_to_ptr.hbm [resolvable:$true] %s169_s26  ;;  %s172_s28 = int_to_ptr.vmem [resolvable:$true] %s171_s28 }
  0x1b   : > { %p920_p2 = pnand %p600_p7, %p76_p5  ;;  %s159_s5 = scalar_lea.sflag [#allocation3], %s158_s11 }
  0x1c   : > { %s702_s7 = sshra.s32 %s170_s26, 4  ;;  %s709_s20 = scalar_lea.hbm %s1019_s2, 128  ;;  %s703_s7 = int_to_ptr.hbm [resolvable:$true] %s702_s7 }
  0x1d   : > { %s704_s8 = scalar_lea.hbm %s703_s7, 64  ;;  %p706_p10 = pneg %p920_p2 }
  0x1e   : > { %p705_p9 = scmp.ne.s32.totalorder %s703_s7, %s704_s8  ;;  %p710_p0 = scmp.lt.s32.totalorder %s703_s7, %s1019_s2 }
  0x1f   : > { %p711_p5 = scmp.lt.s32.totalorder %s709_s20, %s704_s8 }
  0x20   : > { %p707_p12 = pnand %p706_p10, %p705_p9 }
  0x21   : > { %p712_p7 = por %p711_p5, %p710_p0 }
  0x22   : > { %p708_p13 = pneg %p707_p12 }
  0x24   : > { %p713_p11 = pnand %p712_p7, %p708_p13 }
  0x26   : > { %716 = shalt.err (!%p713_p11)
}
  0x27   : > { %593 = dma.hbm_to_vmem [thread:$0]  (!%p920_p2), %s170_s26, 1024, %s172_s28, %s159_s5, %s809_s29, %s809_s29, %s810_s30  }
  0x28   : > { %183 = sbr.rel (%p877_p8) target bundleno = 353 (0x161), region = 32 }
  0x2d   : > { %777 = dma.done.wait (%p81_p1), [#allocation3], 256  }
  0x2e   : > { %779 = vsyncadd (%p81_p1), [#allocation3], 4294967040 }
  0x2f   : > { %781 = dma.done.wait (%p81_p1), [#allocation6], 256  }
  0x30   : > { %783 = vsyncadd (%p81_p1), [#allocation6], 4294967040  ;;  %s195_s29 = sand.u32 1, %s855_s16   ;;  %s197_s30 = sand.u32 1, %s798_s13  }
  0x31   : > { %s951_s23 = sshll.u32 %s197_s30, 6  ;;  %s196_s11 = scalar_lea.sflag [#allocation3], %s195_s29 }
  0x32   : > { %s199_s25 = scalar_lea.vmem [#allocation7], %s951_s23 }
  0x33   : > { %785 = dma.done.wait (%p864_p4), %s196_s11, 1024  }
  0x34   : > { %787 = vsyncadd (%p864_p4), %s196_s11, 4294966272  ;;  %v226_v0 = vld [vmem:[#allocation5 + $0x8] sm:$0xff]  ;;  %v225_v1 = vld [vmem:[#allocation5] sm:$0xff]  ;;  %vm235_vm0 = vcmask 130048   ;;  %s222_s18 = scalar_lea.vmem [#allocation8], %s951_s23  ;;  %s566_s26 = sshll.u32 %s855_s16, 6 }
  0x35   : > { %274 = vmatpush.msra.mxu0 %v226_v0  ;;  %567 = vmatpush.msra.mxu2 %v226_v0  ;;  %v227_v2 = vld [vmem:[%s199_s25] sm:$0xff]  ;;  %v233_v4 = vld [vmem:[%s199_s25 + $0x30] sm:$0xff]  ;;  %v228_v5 = vld [vmem:[%s199_s25 + $0x8] sm:$0xff]  ;;  %s425_s4 = scalar_lea.hbm %s1020_s3, %s566_s26  ;;  %s426_s5 = sshll.u32 %s222_s18, 4  ;;  %s427_s5 = int_to_ptr.vmem [resolvable:$true] %s426_s5 }
  0x36   : > { %v231_v3 = vld [vmem:[%s199_s25 + $0x20] sm:$0xff]  ;;  %568 = vmatpush.msra.mxu3 %v226_v0  ;;  %v232_v6 = vld [vmem:[%s199_s25 + $0x28] sm:$0xff]  ;;  %v234_v7 = vld [vmem:[%s199_s25 + $0x38] sm:$0xff]  ;;  %s428_s7 = sshll.u32 %s425_s4, 4  ;;  %s413_s16 = scalar_lea.sflag [#allocation4], %s197_s30  ;;  %s429_s7 = int_to_ptr.hbm [resolvable:$true] %s428_s7 }
  0x37   : > { %275 = vmatpush.msra.mxu0 %v225_v1  ;;  %569 = vmatpush.msra.mxu2 %v225_v1  ;;  %v229_v8 = vld [vmem:[%s199_s25 + $0x10] sm:$0xff]  ;;  %v230_v9 = vld [vmem:[%s199_s25 + $0x18] sm:$0xff]  ;;  %v301_v14 = vld [vmem:[#allocation2] sm:$0xff]  ;;  %s746_s8 = sshra.s32 %s429_s7, 4  ;;  %s752_s22 = scalar_lea.hbm %s1020_s3, 128  ;;  %s747_s8 = int_to_ptr.hbm [resolvable:$true] %s746_s8 }
  0x38   : > { %535 = vmatmul.msk.f32.vlgmr.msra.gmra.mxu0 %vm235_vm0, %v227_v2  ;;  %539 = vmatmul.msk.f32.vlgmr.msra.gmra.mxu2 %vm235_vm0, %v231_v3  ;;  %v302_v18 = vld [vmem:[#allocation2 + $0x8] sm:$0xff]  ;;  %s748_s17 = scalar_lea.hbm %s747_s8, 64  ;;  %p753_p11 = scmp.lt.s32.totalorder %s747_s8, %s1020_s3 }
  0x39   : > { %570 = vmatpush.msra.mxu3 %v225_v1  ;;  %p749_p1 = scmp.ne.s32.totalorder %s747_s8, %s748_s17  ;;  %p754_p2 = scmp.lt.s32.totalorder %s752_s22, %s748_s17 }
  0x3a   : > { %541 = vmatmul.msk.f32.vlgmr.msra.gmra.mxu3 %vm235_vm0, %v233_v4 }
  0x3b   : > { %p750_p4 = pnand %p749_p1, %p906_p3  ;;  %p755_p9 = por %p754_p2, %p753_p11 }
  0x3d   : > { %p751_p8 = pneg %p750_p4 }
  0x3f   : > { %p756_p10 = pnand %p755_p9, %p751_p8 }
  0x40   : > { %536 = vmatmul.msk.f32.gmra.mxu0 %vm235_vm0, %v228_v5  ;;  %540 = vmatmul.msk.f32.gmra.mxu2 %vm235_vm0, %v232_v6 }
  0x42   : > { %542 = vmatmul.msk.f32.gmra.mxu3 %vm235_vm0, %v234_v7 }
  0x48   : > { %537 = vmatmul.msk.f32.gmra.mxu0 %vm235_vm0, %v229_v8 }
  0x50   : > { %538 = vmatmul.msk.f32.gmra.mxu0 %vm235_vm0, %v230_v9 }
  0xb5   : > { %v277_v10 = vpop.f32.mrf.mxu0 }
  0xbb   : > { %v289_v11 = vpop.f32.mrf.mxu2 }
  0xbd   : > { %v280_v12 = vpop.f32.mrf.mxu0  ;;  %v295_v13 = vpop.f32.mrf.mxu3 }
  0xbe   : > { %323 = vmatpush.msra.mxu1 %v280_v12 }
  0xc0   : > { %324 = vmatpush.msra.mxu1 %v277_v10 }
  0xc1   : > { %543 = vmatmul.msk.f32.vlgmr.msra.gmra.mxu1 %vm235_vm0, %v301_v14 }
  0xc3   : > { %v292_v15 = vpop.f32.mrf.mxu2 }
  0xc4   : > { %374 = vmatpush.msrb.mxu3 %v292_v15 }
  0xc5   : > { %v283_v16 = vpop.f32.mrf.mxu0  ;;  %v298_v17 = vpop.f32.mrf.mxu3 }
  0xc6   : > { %375 = vmatpush.msrb.mxu3 %v289_v11  ;;  %400 = vmatpush.msrb.mxu1 %v298_v17 }
  0xc7   : > { %549 = vmatmul.msk.f32.vlgmr.msrb.gmra.mxu3 %vm235_vm0, %v301_v14 }
  0xc8   : > { %401 = vmatpush.msrb.mxu1 %v295_v13 }
  0xc9   : > { %544 = vmatmul.msk.f32.gmra.mxu1 %vm235_vm0, %v302_v18 }
  0xcd   : > { %v286_v19 = vpop.f32.mrf.mxu0 }
  0xce   : > { %348 = vmatpush.msrb.mxu2 %v286_v19 }
  0xcf   : > { %550 = vmatmul.msk.f32.gmra.mxu3 %vm235_vm0, %v302_v18 }
  0xd0   : > { %349 = vmatpush.msrb.mxu2 %v283_v16 }
  0xd1   : > { %545 = vmatmul.msk.f32.vlgmr.msrb.gmra.mxu2 %vm235_vm0, %v301_v14  ;;  %553 = vmatmul.msk.f32.vlgmr.msrb.gmra.mxu1 %vm235_vm0, %v301_v14 }
  0xd9   : > { %546 = vmatmul.msk.f32.gmra.mxu2 %vm235_vm0, %v302_v18  ;;  %554 = vmatmul.msk.f32.gmra.mxu1 %vm235_vm0, %v302_v18 }
 0x13e   : > { %v326_v20 = vpop.f32.mrf.mxu1 }
 0x13f   : > { %332 = vst.msk [vmem:[%s222_s18] sm:$0xff] %vm235_vm0, %v326_v20 }
 0x146   : > { %v329_v21 = vpop.f32.mrf.mxu1 }
 0x147   : > { %333 = vst.msk [vmem:[%s222_s18 + $0x8] sm:$0xff] %vm235_vm0, %v329_v21 }
 0x14a   : > { %v377_v22 = vpop.f32.mrf.mxu3 }
 0x14b   : > { %551 = vst.msk [vmem:[%s222_s18 + $0x20] sm:$0xff] %vm235_vm0, %v377_v22 }
 0x14e   : > { %v403_v23 = vpop.f32.mrf.mxu1 }
 0x14f   : > { %555 = vst.msk [vmem:[%s222_s18 + $0x30] sm:$0xff] %vm235_vm0, %v403_v23 }
 0x152   : > { %v380_v24 = vpop.f32.mrf.mxu3 }
 0x153   : > { %552 = vst.msk [vmem:[%s222_s18 + $0x28] sm:$0xff] %vm235_vm0, %v380_v24 }
 0x154   : > { %v351_v25 = vpop.f32.mrf.mxu2 }
 0x155   : > { %547 = vst.msk [vmem:[%s222_s18 + $0x10] sm:$0xff] %vm235_vm0, %v351_v25 }
 0x156   : > { %v406_v26 = vpop.f32.mrf.mxu1 }
 0x157   : > { %556 = vst.msk [vmem:[%s222_s18 + $0x38] sm:$0xff] %vm235_vm0, %v406_v26 }
 0x15c   : > { %v354_v27 = vpop.f32.mrf.mxu2 }
 0x15d   : > { %548 = vst.msk [vmem:[%s222_s18 + $0x18] sm:$0xff] %vm235_vm0, %v354_v27 }
 0x15e   : > { %759 = shalt.err (!%p756_p10)
}
 0x15f   : > { %s812_s30 = smov 128   ;;  %s813_s23 = smov 8  }
 0x160   : > { %581 = dma.vmem_to_hbm [thread:$0]  (%p906_p3), %s427_s5, 1024, %s429_s7, %s413_s16, %s812_s30, %s812_s30, %s813_s23  }
 0x161 PF: > { %s443_s11 = sand.u32 1, %s794_s12   ;;  %p1026_p12 = scmp.ge.s32.totalorder %s806_s15, 2 }
 0x162   : > { %s444_s25 = scalar_lea.sflag [#allocation4], %s443_s11 }
 0x163   : > { %p595_p13 = pnand %p1026_p12, %p869_p6 }
 0x165   : > { %p596_p0 = pneg %p595_p13 }
 0x167   : > { %789 = dma.done.wait (%p596_p0), %s444_s25, 1024  }
 0x168   : > { %791 = vsyncadd (%p596_p0), %s444_s25, 4294966272  ;;  %p15_p5 = scmp.ge.s32.totalorder %s896_s6, 4   ;;  %s1027_s12 = smov %s798_s13 }
 0x169   : > { %s1028_s13 = smov %s802_s14  ;;  %s1029_s14 = smov %s911_s10 }
 0x16a   : > { %s1030_s15 = smov %s896_s6  ;;  %17 = sbr.rel (!%p15_p5) target bundleno = 5 (0x5), region = 87 }
 0x16f   :  { %450 = vsyncpa [#allocation3], 1 }
 0x170   :  { %452 = vsyncpa [#allocation3 + $0x1], 1 }
 0x171   :  { %453 = vsyncpa [#allocation6], 1 }
 0x172   :  { %454 = vsyncpa [#allocation4], 1 }
 0x173   :  { %456 = vsyncpa [#allocation4 + $0x1], 1 }

</bundles_post_ra>
